<compile_context>
chip_gen: v6e
topology: v6e:2x2x1
jax: 0.10.0
libtpu: 0.0.40
codegen_flags: <defaults>
</compile_context>

<pallas_src>
import functools
import math

import jax
import jax.numpy as jnp
from jax.experimental import pallas as pl
from jax.experimental.pallas import tpu as pltpu


def _round_up(x, m):
    return ((x + m - 1) // m) * m


def _pad_to(a, shape, fill=0.0):
    pads = [(0, s - d) for d, s in zip(a.shape, shape)]
    if all(p == (0, 0) for p in pads):
        return a
    return jnp.pad(a, pads, constant_values=fill)


# ---------------------------------------------------------------------------
# Phase 1: batched input projection  xproj = x @ Wi + (bi + bh)
# One big GEMM over all time steps at once (hoisted out of the recurrence).
# ---------------------------------------------------------------------------
def input_proj_kernel(x_ref, w_ref, b_ref, o_ref):
    x = x_ref[...]
    o_ref[...] = (jnp.dot(x.astype(w_ref.dtype), w_ref[...],
                          preferred_element_type=jnp.float32)
                  + b_ref[...]).astype(o_ref.dtype)


def input_projection(xs_flat, w, b, *, tm):
    M, Ip = xs_flat.shape
    Hp = w.shape[1]
    Mp = _round_up(M, tm)
    xs_p = _pad_to(xs_flat, (Mp, Ip))
    flops = 2 * Mp * Ip * Hp
    bytes_accessed = 4 * (Mp * Ip + Ip * Hp + Hp + Mp * Hp)
    out = pl.pallas_call(
        input_proj_kernel,
        out_shape=jax.ShapeDtypeStruct((Mp, Hp), jnp.float32),
        grid=(Mp // tm,),
        in_specs=[
            pl.BlockSpec((tm, Ip), lambda i: (i, 0)),
            pl.BlockSpec((Ip, Hp), lambda i: (0, 0)),      # Wi (resident)
            pl.BlockSpec((1, Hp), lambda i: (0, 0)),        # bi + bh (resident)
        ],
        out_specs=pl.BlockSpec((tm, Hp), lambda i: (i, 0)),
        compiler_params=pltpu.CompilerParams(
            dimension_semantics=("parallel",)),
        cost_estimate=pl.CostEstimate(flops=int(flops), transcendentals=0,
                                      bytes_accessed=int(bytes_accessed)),
    )(xs_p, w, b)
    return out[:M]


# ---------------------------------------------------------------------------
# Phase 2: recurrence (time-blocked) + batched output projection / log_softmax
# ---------------------------------------------------------------------------
def rnn_recurrent_kernel(xproj_ref, h0_ref, wh_ref, wo_ref, bo_ref,
                         out_ref, hlast_ref, hblk_ref,
                         *, seq_len, need_mask):
    tb = pl.program_id(1)
    tt, bt, hp = hblk_ref.shape
    op = out_ref.shape[-1]

    # Initialize the resident hidden-state carry from h0 at the first time
    # block of this batch tile.
    @pl.when(tb == 0)
    def _():
        hlast_ref[...] = h0_ref[...]

    wh = wh_ref[...]            # recurrent weights, loaded once per time block

    def step(i, h):
        # Serial critical path: h @ Wh (MXU) + add + tanh (EUP).  Input
        # projection and both biases were folded into xproj in phase 1.
        pre = xproj_ref[i] + jnp.dot(h.astype(wh.dtype), wh,
                                     preferred_element_type=jnp.float32)
        h_new = jnp.tanh(pre)
        if need_mask:
            valid = (tb * tt + i) < seq_len
            h_new = jnp.where(valid, h_new, h)
        hblk_ref[i] = h_new
        return h_new

    h_final = jax.lax.fori_loop(0, tt, step, hlast_ref[...], unroll=True)
    hlast_ref[...] = h_final

    # Output projection + numerically-stable log_softmax, batched over the
    # whole time block: one (tt*bt, Hp) x (Hp, Op) matmul instead of tt tiny
    # ones.  Padded class lanes carry a -1e30 bias -> exp underflows to 0.
    hall = hblk_ref[...].reshape(tt * bt, hp)
    logits = jnp.dot(hall.astype(wo_ref.dtype), wo_ref[...],
                     preferred_element_type=jnp.float32) + bo_ref[...]
    m = jnp.max(logits, axis=-1, keepdims=True)
    shifted = logits - m
    lse = jnp.log(jnp.sum(jnp.exp(shifted), axis=-1, keepdims=True))
    out_ref[...] = (shifted - lse).reshape(tt, bt, op).astype(out_ref.dtype)


def rnn_sequence_forward(xs, h0, params, *, weights_dtype=jnp.float32,
                         time_block=16):
    """xs: (T, B, input_size), h0: (B, hidden_size)
       -> (log_probs (T, B, output_size), last_hidden (B, hidden_size))."""
    T, B, I = xs.shape
    H = params["wh"].shape[1]
    O = params["wo"].shape[1]

    # Lane/sublane-dense padded sizes.
    Ip = _round_up(I, 128)
    Hp = _round_up(H, 128)
    Op = _round_up(O, 128)

    # Batch tiling: keep >=2 batch tiles when possible so the "parallel" axis
    # can shard across both v7x TensorCores.
    Bp = _round_up(B, 8)
    if Bp >= 16:
        bt = min(128, _round_up(pl.cdiv(Bp, 2), 8))
        Bp = _round_up(Bp, bt)
    else:
        bt = Bp

    # Time blocking: amortize ~0.35us/grid-step overhead and grow the output
    # GEMM's M dimension to TT*bt.
    TT = min(T, time_block)
    Tp = _round_up(T, TT)

    # ----- padded / fused parameters ----------------------------------------
    wi = _pad_to(params["wi"], (Ip, Hp)).astype(weights_dtype)
    b_ih = _pad_to(params["bi"] + params["bh"], (1, Hp))     # fold both biases
    wh = _pad_to(params["wh"], (Hp, Hp)).astype(weights_dtype)
    wo = _pad_to(params["wo"], (Hp, Op)).astype(weights_dtype)
    bo = _pad_to(params["bo"], (1, Op), fill=-1e30)          # mask padded classes

    xs_p = _pad_to(xs, (T, Bp, Ip))
    h0_p = _pad_to(h0, (Bp, Hp))

    # Phase 1: hoisted input projection for every time step at once.
    M = T * Bp
    tm = min(256, _round_up(M, 8))
    xproj = input_projection(xs_p.reshape(M, Ip), wi, b_ih, tm=tm)
    xproj = _pad_to(xproj.reshape(T, Bp, Hp), (Tp, Bp, Hp))

    # Phase 2: recurrence + time-blocked output projection.
    grid = (Bp // bt, Tp // TT)

    flops = 2 * Tp * Bp * (Hp * Hp + Hp * Op)
    transcendentals = Tp * Bp * (Hp + Op)       # tanh + exp (advisory)
    bytes_accessed = 4 * (Tp * Bp * Hp + Bp * Hp + Hp * Hp + Hp * Op + Op
                          + Tp * Bp * Op + Bp * Hp)

    wbytes = jnp.dtype(weights_dtype).itemsize
    vmem_needed = (wbytes * (Hp * Hp + Hp * Op)
                   + 4 * (2 * TT * bt * Hp       # xproj blocks (double-buffered)
                          + 2 * TT * bt * Op     # out blocks
                          + TT * bt * Hp         # hblk scratch
                          + 2 * bt * Hp          # h0 + hlast
                          + Hp + Op))
    vmem_limit = int(min(max(2 * vmem_needed, 32 * 1024 * 1024),
                         100 * 1024 * 1024))

    kernel = functools.partial(rnn_recurrent_kernel,
                               seq_len=T, need_mask=(Tp != T))

    out_p, hlast_p = pl.pallas_call(
        kernel,
        out_shape=(jax.ShapeDtypeStruct((Tp, Bp, Op), jnp.float32),
                   jax.ShapeDtypeStruct((Bp, Hp), jnp.float32)),
        grid=grid,
        in_specs=[
            pl.BlockSpec((TT, bt, Hp), lambda b, t: (t, b, 0)),   # xproj block
            pl.BlockSpec((bt, Hp), lambda b, t: (b, 0)),          # h0
            pl.BlockSpec((Hp, Hp), lambda b, t: (0, 0)),          # Wh (resident)
            pl.BlockSpec((Hp, Op), lambda b, t: (0, 0)),          # Wo (resident)
            pl.BlockSpec((1, Op), lambda b, t: (0, 0)),           # bo (resident)
        ],
        out_specs=(
            pl.BlockSpec((TT, bt, Op), lambda b, t: (t, b, 0)),   # log-probs block
            pl.BlockSpec((bt, Hp), lambda b, t: (b, 0)),          # hidden carry/final
        ),
        scratch_shapes=[pltpu.VMEM((TT, bt, Hp), jnp.float32)],
        compiler_params=pltpu.CompilerParams(
            dimension_semantics=("parallel", "arbitrary"),
            vmem_limit_bytes=vmem_limit),
        cost_estimate=pl.CostEstimate(flops=int(flops),
                                      transcendentals=int(transcendentals),
                                      bytes_accessed=int(bytes_accessed)),
    )(xproj, h0_p, wh, wo, bo)

    return out_p[:T, :B, :O], hlast_p[:B, :H]


def rnn_forward(x, h, params):
    """Single-step API matching the PyTorch module: (output, hidden)."""
    out_seq, h_new = rnn_sequence_forward(x[None], h, params)
    return out_seq[0], h_new


def init_params(key, input_size, hidden_size, output_size):
    """nn.Linear-style init: U(-1/sqrt(fan_in), 1/sqrt(fan_in)); weights stored
    transposed as (in, out) so the kernel does x @ W."""
    ks = jax.random.split(key, 6)

    def linear(kw, kb, fan_in, fan_out):
        bound = 1.0 / math.sqrt(fan_in)
        w = jax.random.uniform(kw, (fan_in, fan_out), jnp.float32, -bound, bound)
        b = jax.random.uniform(kb, (1, fan_out), jnp.float32, -bound, bound)
        return w, b

    wi, bi = linear(ks[0], ks[1], input_size, hidden_size)
    wh, bh = linear(ks[2], ks[3], hidden_size, hidden_size)
    wo, bo = linear(ks[4], ks[5], hidden_size, output_size)
    return {"wi": wi, "bi": bi, "wh": wh, "bh": bh, "wo": wo, "bo": bo}


def reference_step(x, h, p):
    hidden = jnp.tanh(x @ p["wi"] + p["bi"] + h @ p["wh"] + p["bh"])
    logits = hidden @ p["wo"] + p["bo"]
    return jax.nn.log_softmax(logits, axis=1), hidden


def reference_sequence(xs, h0, p):
    def step(h, x):
        logp, h_new = reference_step(x, h, p)
        return h_new, logp
    h_last, logps = jax.lax.scan(step, h0, xs)
    return logps, h_last


if __name__ == "__main__":
    batch = 2
    input_size = 16     # e.g. one-hot character features
    hidden_size = 32
    output_size = 8     # number of classes
    seq_len = 8

    key = jax.random.PRNGKey(0)
    k_param, k_x = jax.random.split(key)
    params = init_params(k_param, input_size, hidden_size, output_size)

    xs = jax.random.normal(k_x, (seq_len, batch, input_size), jnp.float32)
    h0 = jnp.zeros((batch, hidden_size), jnp.float32)   # RNN.init_hidden per sample

    # Full-sequence fused kernels (phase-1 GEMM + phase-2 recurrence).
    out_seq, h_last = jax.jit(rnn_sequence_forward)(xs, h0, params)
    out_seq = jax.block_until_ready(out_seq)
    h_last = jax.block_until_ready(h_last)

    ref_seq, ref_h_last = reference_sequence(xs, h0, params)
    assert jnp.allclose(out_seq, ref_seq, atol=5e-5, rtol=5e-5), "sequence log_softmax mismatch"
    assert jnp.allclose(h_last, ref_h_last, atol=5e-5, rtol=5e-5), "sequence hidden mismatch"

    # Single-step path (exact PyTorch forward signature).
    out1, h1 = jax.jit(rnn_forward)(xs[0], h0, params)
    out1 = jax.block_until_ready(out1)
    ref1, ref_h1 = reference_step(xs[0], h0, params)
    assert jnp.allclose(out1, ref1, atol=5e-5, rtol=5e-5), "step log_softmax mismatch"
    assert jnp.allclose(h1, ref_h1, atol=5e-5, rtol=5e-5), "step hidden mismatch"

    print("KERNEL_OK")
</pallas_src>

<mosaic_0001>
module attributes {stable_mosaic.version = 11 : i64} {
  func.func @input_proj_kernel(%arg0: i32, %arg1: memref<64x128xf32, #tpu.memory_space<vmem>>, %arg2: memref<128x128xf32, #tpu.memory_space<vmem>>, %arg3: memref<1x128xf32, #tpu.memory_space<vmem>>, %arg4: memref<64x128xf32, #tpu.memory_space<vmem>>) attributes {dimension_semantics = [#tpu.dimension_semantics<parallel>], iteration_bounds = array<i64: 1>, scalar_prefetch = 0 : i64, scratch_operands = 0 : i64, tpu.core_type = #tpu.core_type<tc>, window_params = [{transform_indices = @transform_0, window_bounds = array<i64: 64, 128>}, {pipeline_mode = #tpu.pipeline_mode<synchronous>, transform_indices = @transform_1, window_bounds = array<i64: 128, 128>}, {pipeline_mode = #tpu.pipeline_mode<synchronous>, transform_indices = @transform_2, window_bounds = array<i64: 1, 128>}, {transform_indices = @transform_3, window_bounds = array<i64: 64, 128>}]} {
    %c0 = arith.constant 0 : index
    %c0_0 = arith.constant 0 : index
    %0 = vector.load %arg1[%c0, %c0_0] : memref<64x128xf32, #tpu.memory_space<vmem>>, vector<64x128xf32>
    %c0_1 = arith.constant 0 : index
    %c0_2 = arith.constant 0 : index
    %1 = vector.load %arg2[%c0_1, %c0_2] : memref<128x128xf32, #tpu.memory_space<vmem>>, vector<128x128xf32>
    %cst = arith.constant dense<0.000000e+00> : vector<64x128xf32>
    %2 = tpu.matmul %0, %1, %cst {dimension_numbers = #tpu.dot_dimension_numbers<[1], [0], [0], [1], [0, 0, 1, 1], [], []>} : vector<64x128xf32>, vector<128x128xf32>, vector<64x128xf32> -> vector<64x128xf32>
    %c0_3 = arith.constant 0 : index
    %c0_4 = arith.constant 0 : index
    %3 = vector.load %arg3[%c0_3, %c0_4] : memref<1x128xf32, #tpu.memory_space<vmem>>, vector<1x128xf32>
    %4 = vector.broadcast %3 : vector<1x128xf32> to vector<64x128xf32>
    %5 = arith.addf %2, %4 : vector<64x128xf32>
    %c0_5 = arith.constant 0 : index
    %c0_6 = arith.constant 0 : index
    %6 = vector.load %arg4[%c0_5, %c0_6] : memref<64x128xf32, #tpu.memory_space<vmem>>, vector<64x128xf32>
    tpu.vector_store %arg4[%c0_5, %c0_6], %5 {strides = array<i32>} : memref<64x128xf32, #tpu.memory_space<vmem>>, vector<64x128xf32>,
    return
  }
  func.func @transform_0(%arg0: i32) -> (i32, i32) {
    %c0_i32 = arith.constant 0 : i32
    %c0_i32_0 = arith.constant 0 : i32
    return %arg0, %c0_i32 : i32, i32
  }
  func.func @transform_1(%arg0: i32) -> (i32, i32) {
    %c0_i32 = arith.constant 0 : i32
    %c0_i32_0 = arith.constant 0 : i32
    %c0_i32_1 = arith.constant 0 : i32
    return %c0_i32, %c0_i32_0 : i32, i32
  }
  func.func @transform_2(%arg0: i32) -> (i32, i32) {
    %c0_i32 = arith.constant 0 : i32
    %c0_i32_0 = arith.constant 0 : i32
    %c0_i32_1 = arith.constant 0 : i32
    return %c0_i32, %c0_i32_0 : i32, i32
  }
  func.func @transform_3(%arg0: i32) -> (i32, i32) {
    %c0_i32 = arith.constant 0 : i32
    %c0_i32_0 = arith.constant 0 : i32
    return %arg0, %c0_i32 : i32, i32
  }
}

module attributes {stable_mosaic.version = 11 : i64} {
  func.func @rnn_recurrent_kernel(%arg0: i32, %arg1: i32, %arg2: memref<8x8x128xf32, #tpu.memory_space<vmem>>, %arg3: memref<8x128xf32, #tpu.memory_space<vmem>>, %arg4: memref<128x128xf32, #tpu.memory_space<vmem>>, %arg5: memref<128x128xf32, #tpu.memory_space<vmem>>, %arg6: memref<1x128xf32, #tpu.memory_space<vmem>>, %arg7: memref<8x8x128xf32, #tpu.memory_space<vmem>>, %arg8: memref<8x128xf32, #tpu.memory_space<vmem>>, %arg9: memref<8x8x128xf32, #tpu.memory_space<vmem>>) attributes {dimension_semantics = [#tpu.dimension_semantics<parallel>, #tpu.dimension_semantics<arbitrary>], iteration_bounds = array<i64: 1, 1>, scalar_prefetch = 0 : i64, scratch_operands = 1 : i64, tpu.core_type = #tpu.core_type<tc>, window_params = [{transform_indices = @transform_0, window_bounds = array<i64: 8, 8, 128>}, {transform_indices = @transform_1, window_bounds = array<i64: 8, 128>}, {pipeline_mode = #tpu.pipeline_mode<synchronous>, transform_indices = @transform_2, window_bounds = array<i64: 128, 128>}, {pipeline_mode = #tpu.pipeline_mode<synchronous>, transform_indices = @transform_3, window_bounds = array<i64: 128, 128>}, {pipeline_mode = #tpu.pipeline_mode<synchronous>, transform_indices = @transform_4, window_bounds = array<i64: 1, 128>}, {transform_indices = @transform_5, window_bounds = array<i64: 8, 8, 128>}, {transform_indices = @transform_6, window_bounds = array<i64: 8, 128>}]} {
    %c0_i32 = arith.constant 0 : i32
    %0 = arith.cmpi eq, %arg1, %c0_i32 : i32
    %1 = arith.extui %0 : i1 to i32
    %c0_i32_0 = arith.constant 0 : i32
    %2 = arith.cmpi ne, %1, %c0_i32_0 : i32
    scf.if %2 {
      %c0_59 = arith.constant 0 : index
      %c0_60 = arith.constant 0 : index
      %105 = vector.load %arg3[%c0_59, %c0_60] : memref<8x128xf32, #tpu.memory_space<vmem>>, vector<8x128xf32>
      %c0_61 = arith.constant 0 : index
      %c0_62 = arith.constant 0 : index
      %106 = vector.load %arg8[%c0_61, %c0_62] : memref<8x128xf32, #tpu.memory_space<vmem>>, vector<8x128xf32>
      tpu.vector_store %arg8[%c0_61, %c0_62], %105 {strides = array<i32>} : memref<8x128xf32, #tpu.memory_space<vmem>>, vector<8x128xf32>,
    } else {
    }
    %c0 = arith.constant 0 : index
    %c0_1 = arith.constant 0 : index
    %3 = vector.load %arg4[%c0, %c0_1] : memref<128x128xf32, #tpu.memory_space<vmem>>, vector<128x128xf32>
    %c0_2 = arith.constant 0 : index
    %c0_3 = arith.constant 0 : index
    %4 = vector.load %arg8[%c0_2, %c0_3] : memref<8x128xf32, #tpu.memory_space<vmem>>, vector<8x128xf32>
    %c0_i32_4 = arith.constant 0 : i32
    %5 = arith.index_cast %c0_i32_4 : i32 to index
    %c0_5 = arith.constant 0 : index
    %c0_6 = arith.constant 0 : index
    %6 = vector.load %arg2[%5, %c0_5, %c0_6] : memref<8x8x128xf32, #tpu.memory_space<vmem>>, vector<1x8x128xf32>
    %7 = vector.shape_cast %6 : vector<1x8x128xf32> to vector<8x128xf32>
    %cst = arith.constant dense<0.000000e+00> : vector<8x128xf32>
    %8 = tpu.matmul %4, %3, %cst {dimension_numbers = #tpu.dot_dimension_numbers<[1], [0], [0], [1], [0, 0, 1, 1], [], []>} : vector<8x128xf32>, vector<128x128xf32>, vector<8x128xf32> -> vector<8x128xf32>
    %9 = arith.addf %7, %8 : vector<8x128xf32>
    %10 = math.tanh %9 : vector<8x128xf32>
    %11 = arith.index_cast %c0_i32_4 : i32 to index
    %c0_7 = arith.constant 0 : index
    %c0_8 = arith.constant 0 : index
    %12 = vector.load %arg9[%11, %c0_7, %c0_8] : memref<8x8x128xf32, #tpu.memory_space<vmem>>, vector<1x8x128xf32>
    %13 = vector.shape_cast %12 : vector<1x8x128xf32> to vector<8x128xf32>
    %14 = vector.shape_cast %10 : vector<8x128xf32> to vector<1x8x128xf32>
    tpu.vector_store %arg9[%11, %c0_7, %c0_8], %14 {strides = array<i32>} : memref<8x8x128xf32, #tpu.memory_space<vmem>>, vector<1x8x128xf32>,
    %c1_i32 = arith.constant 1 : i32
    %15 = arith.index_cast %c1_i32 : i32 to index
    %c0_9 = arith.constant 0 : index
    %c0_10 = arith.constant 0 : index
    %16 = vector.load %arg2[%15, %c0_9, %c0_10] : memref<8x8x128xf32, #tpu.memory_space<vmem>>, vector<1x8x128xf32>
    %17 = vector.shape_cast %16 : vector<1x8x128xf32> to vector<8x128xf32>
    %cst_11 = arith.constant dense<0.000000e+00> : vector<8x128xf32>
    %18 = tpu.matmul %10, %3, %cst_11 {dimension_numbers = #tpu.dot_dimension_numbers<[1], [0], [0], [1], [0, 0, 1, 1], [], []>} : vector<8x128xf32>, vector<128x128xf32>, vector<8x128xf32> -> vector<8x128xf32>
    %19 = arith.addf %17, %18 : vector<8x128xf32>
    %20 = math.tanh %19 : vector<8x128xf32>
    %21 = arith.index_cast %c1_i32 : i32 to index
    %c0_12 = arith.constant 0 : index
    %c0_13 = arith.constant 0 : index
    %22 = vector.load %arg9[%21, %c0_12, %c0_13] : memref<8x8x128xf32, #tpu.memory_space<vmem>>, vector<1x8x128xf32>
    %23 = vector.shape_cast %22 : vector<1x8x128xf32> to vector<8x128xf32>
    %24 = vector.shape_cast %20 : vector<8x128xf32> to vector<1x8x128xf32>
    tpu.vector_store %arg9[%21, %c0_12, %c0_13], %24 {strides = array<i32>} : memref<8x8x128xf32, #tpu.memory_space<vmem>>, vector<1x8x128xf32>,
    %c2_i32 = arith.constant 2 : i32
    %25 = arith.index_cast %c2_i32 : i32 to index
    %c0_14 = arith.constant 0 : index
    %c0_15 = arith.constant 0 : index
    %26 = vector.load %arg2[%25, %c0_14, %c0_15] : memref<8x8x128xf32, #tpu.memory_space<vmem>>, vector<1x8x128xf32>
    %27 = vector.shape_cast %26 : vector<1x8x128xf32> to vector<8x128xf32>
    %cst_16 = arith.constant dense<0.000000e+00> : vector<8x128xf32>
    %28 = tpu.matmul %20, %3, %cst_16 {dimension_numbers = #tpu.dot_dimension_numbers<[1], [0], [0], [1], [0, 0, 1, 1], [], []>} : vector<8x128xf32>, vector<128x128xf32>, vector<8x128xf32> -> vector<8x128xf32>
    %29 = arith.addf %27, %28 : vector<8x128xf32>
    %30 = math.tanh %29 : vector<8x128xf32>
    %31 = arith.index_cast %c2_i32 : i32 to index
    %c0_17 = arith.constant 0 : index
    %c0_18 = arith.constant 0 : index
    %32 = vector.load %arg9[%31, %c0_17, %c0_18] : memref<8x8x128xf32, #tpu.memory_space<vmem>>, vector<1x8x128xf32>
    %33 = vector.shape_cast %32 : vector<1x8x128xf32> to vector<8x128xf32>
    %34 = vector.shape_cast %30 : vector<8x128xf32> to vector<1x8x128xf32>
    tpu.vector_store %arg9[%31, %c0_17, %c0_18], %34 {strides = array<i32>} : memref<8x8x128xf32, #tpu.memory_space<vmem>>, vector<1x8x128xf32>,
    %c3_i32 = arith.constant 3 : i32
    %35 = arith.index_cast %c3_i32 : i32 to index
    %c0_19 = arith.constant 0 : index
    %c0_20 = arith.constant 0 : index
    %36 = vector.load %arg2[%35, %c0_19, %c0_20] : memref<8x8x128xf32, #tpu.memory_space<vmem>>, vector<1x8x128xf32>
    %37 = vector.shape_cast %36 : vector<1x8x128xf32> to vector<8x128xf32>
    %cst_21 = arith.constant dense<0.000000e+00> : vector<8x128xf32>
    %38 = tpu.matmul %30, %3, %cst_21 {dimension_numbers = #tpu.dot_dimension_numbers<[1], [0], [0], [1], [0, 0, 1, 1], [], []>} : vector<8x128xf32>, vector<128x128xf32>, vector<8x128xf32> -> vector<8x128xf32>
    %39 = arith.addf %37, %38 : vector<8x128xf32>
    %40 = math.tanh %39 : vector<8x128xf32>
    %41 = arith.index_cast %c3_i32 : i32 to index
    %c0_22 = arith.constant 0 : index
    %c0_23 = arith.constant 0 : index
    %42 = vector.load %arg9[%41, %c0_22, %c0_23] : memref<8x8x128xf32, #tpu.memory_space<vmem>>, vector<1x8x128xf32>
    %43 = vector.shape_cast %42 : vector<1x8x128xf32> to vector<8x128xf32>
    %44 = vector.shape_cast %40 : vector<8x128xf32> to vector<1x8x128xf32>
    tpu.vector_store %arg9[%41, %c0_22, %c0_23], %44 {strides = array<i32>} : memref<8x8x128xf32, #tpu.memory_space<vmem>>, vector<1x8x128xf32>,
    %c4_i32 = arith.constant 4 : i32
    %45 = arith.index_cast %c4_i32 : i32 to index
    %c0_24 = arith.constant 0 : index
    %c0_25 = arith.constant 0 : index
    %46 = vector.load %arg2[%45, %c0_24, %c0_25] : memref<8x8x128xf32, #tpu.memory_space<vmem>>, vector<1x8x128xf32>
    %47 = vector.shape_cast %46 : vector<1x8x128xf32> to vector<8x128xf32>
    %cst_26 = arith.constant dense<0.000000e+00> : vector<8x128xf32>
    %48 = tpu.matmul %40, %3, %cst_26 {dimension_numbers = #tpu.dot_dimension_numbers<[1], [0], [0], [1], [0, 0, 1, 1], [], []>} : vector<8x128xf32>, vector<128x128xf32>, vector<8x128xf32> -> vector<8x128xf32>
    %49 = arith.addf %47, %48 : vector<8x128xf32>
    %50 = math.tanh %49 : vector<8x128xf32>
    %51 = arith.index_cast %c4_i32 : i32 to index
    %c0_27 = arith.constant 0 : index
    %c0_28 = arith.constant 0 : index
    %52 = vector.load %arg9[%51, %c0_27, %c0_28] : memref<8x8x128xf32, #tpu.memory_space<vmem>>, vector<1x8x128xf32>
    %53 = vector.shape_cast %52 : vector<1x8x128xf32> to vector<8x128xf32>
    %54 = vector.shape_cast %50 : vector<8x128xf32> to vector<1x8x128xf32>
    tpu.vector_store %arg9[%51, %c0_27, %c0_28], %54 {strides = array<i32>} : memref<8x8x128xf32, #tpu.memory_space<vmem>>, vector<1x8x128xf32>,
    %c5_i32 = arith.constant 5 : i32
    %55 = arith.index_cast %c5_i32 : i32 to index
    %c0_29 = arith.constant 0 : index
    %c0_30 = arith.constant 0 : index
    %56 = vector.load %arg2[%55, %c0_29, %c0_30] : memref<8x8x128xf32, #tpu.memory_space<vmem>>, vector<1x8x128xf32>
    %57 = vector.shape_cast %56 : vector<1x8x128xf32> to vector<8x128xf32>
    %cst_31 = arith.constant dense<0.000000e+00> : vector<8x128xf32>
    %58 = tpu.matmul %50, %3, %cst_31 {dimension_numbers = #tpu.dot_dimension_numbers<[1], [0], [0], [1], [0, 0, 1, 1], [], []>} : vector<8x128xf32>, vector<128x128xf32>, vector<8x128xf32> -> vector<8x128xf32>
    %59 = arith.addf %57, %58 : vector<8x128xf32>
    %60 = math.tanh %59 : vector<8x128xf32>
    %61 = arith.index_cast %c5_i32 : i32 to index
    %c0_32 = arith.constant 0 : index
    %c0_33 = arith.constant 0 : index
    %62 = vector.load %arg9[%61, %c0_32, %c0_33] : memref<8x8x128xf32, #tpu.memory_space<vmem>>, vector<1x8x128xf32>
    %63 = vector.shape_cast %62 : vector<1x8x128xf32> to vector<8x128xf32>
    %64 = vector.shape_cast %60 : vector<8x128xf32> to vector<1x8x128xf32>
    tpu.vector_store %arg9[%61, %c0_32, %c0_33], %64 {strides = array<i32>} : memref<8x8x128xf32, #tpu.memory_space<vmem>>, vector<1x8x128xf32>,
    %c6_i32 = arith.constant 6 : i32
    %65 = arith.index_cast %c6_i32 : i32 to index
    %c0_34 = arith.constant 0 : index
    %c0_35 = arith.constant 0 : index
    %66 = vector.load %arg2[%65, %c0_34, %c0_35] : memref<8x8x128xf32, #tpu.memory_space<vmem>>, vector<1x8x128xf32>
    %67 = vector.shape_cast %66 : vector<1x8x128xf32> to vector<8x128xf32>
    %cst_36 = arith.constant dense<0.000000e+00> : vector<8x128xf32>
    %68 = tpu.matmul %60, %3, %cst_36 {dimension_numbers = #tpu.dot_dimension_numbers<[1], [0], [0], [1], [0, 0, 1, 1], [], []>} : vector<8x128xf32>, vector<128x128xf32>, vector<8x128xf32> -> vector<8x128xf32>
    %69 = arith.addf %67, %68 : vector<8x128xf32>
    %70 = math.tanh %69 : vector<8x128xf32>
    %71 = arith.index_cast %c6_i32 : i32 to index
    %c0_37 = arith.constant 0 : index
    %c0_38 = arith.constant 0 : index
    %72 = vector.load %arg9[%71, %c0_37, %c0_38] : memref<8x8x128xf32, #tpu.memory_space<vmem>>, vector<1x8x128xf32>
    %73 = vector.shape_cast %72 : vector<1x8x128xf32> to vector<8x128xf32>
    %74 = vector.shape_cast %70 : vector<8x128xf32> to vector<1x8x128xf32>
    tpu.vector_store %arg9[%71, %c0_37, %c0_38], %74 {strides = array<i32>} : memref<8x8x128xf32, #tpu.memory_space<vmem>>, vector<1x8x128xf32>,
    %c7_i32 = arith.constant 7 : i32
    %75 = arith.index_cast %c7_i32 : i32 to index
    %c0_39 = arith.constant 0 : index
    %c0_40 = arith.constant 0 : index
    %76 = vector.load %arg2[%75, %c0_39, %c0_40] : memref<8x8x128xf32, #tpu.memory_space<vmem>>, vector<1x8x128xf32>
    %77 = vector.shape_cast %76 : vector<1x8x128xf32> to vector<8x128xf32>
    %cst_41 = arith.constant dense<0.000000e+00> : vector<8x128xf32>
    %78 = tpu.matmul %70, %3, %cst_41 {dimension_numbers = #tpu.dot_dimension_numbers<[1], [0], [0], [1], [0, 0, 1, 1], [], []>} : vector<8x128xf32>, vector<128x128xf32>, vector<8x128xf32> -> vector<8x128xf32>
    %79 = arith.addf %77, %78 : vector<8x128xf32>
    %80 = math.tanh %79 : vector<8x128xf32>
    %81 = arith.index_cast %c7_i32 : i32 to index
    %c0_42 = arith.constant 0 : index
    %c0_43 = arith.constant 0 : index
    %82 = vector.load %arg9[%81, %c0_42, %c0_43] : memref<8x8x128xf32, #tpu.memory_space<vmem>>, vector<1x8x128xf32>
    %83 = vector.shape_cast %82 : vector<1x8x128xf32> to vector<8x128xf32>
    %84 = vector.shape_cast %80 : vector<8x128xf32> to vector<1x8x128xf32>
    tpu.vector_store %arg9[%81, %c0_42, %c0_43], %84 {strides = array<i32>} : memref<8x8x128xf32, #tpu.memory_space<vmem>>, vector<1x8x128xf32>,
    %c8_i32 = arith.constant 8 : i32
    %c0_44 = arith.constant 0 : index
    %c0_45 = arith.constant 0 : index
    %85 = vector.load %arg8[%c0_44, %c0_45] : memref<8x128xf32, #tpu.memory_space<vmem>>, vector<8x128xf32>
    tpu.vector_store %arg8[%c0_44, %c0_45], %80 {strides = array<i32>} : memref<8x128xf32, #tpu.memory_space<vmem>>, vector<8x128xf32>,
    %c0_46 = arith.constant 0 : index
    %c0_47 = arith.constant 0 : index
    %c0_48 = arith.constant 0 : index
    %86 = vector.load %arg9[%c0_46, %c0_47, %c0_48] : memref<8x8x128xf32, #tpu.memory_space<vmem>>, vector<8x8x128xf32>
    %87 = vector.shape_cast %86 : vector<8x8x128xf32> to vector<64x128xf32>
    %c0_49 = arith.constant 0 : index
    %c0_50 = arith.constant 0 : index
    %88 = vector.load %arg5[%c0_49, %c0_50] : memref<128x128xf32, #tpu.memory_space<vmem>>, vector<128x128xf32>
    %cst_51 = arith.constant dense<0.000000e+00> : vector<64x128xf32>
    %89 = tpu.matmul %87, %88, %cst_51 {dimension_numbers = #tpu.dot_dimension_numbers<[1], [0], [0], [1], [0, 0, 1, 1], [], []>} : vector<64x128xf32>, vector<128x128xf32>, vector<64x128xf32> -> vector<64x128xf32>
    %c0_52 = arith.constant 0 : index
    %c0_53 = arith.constant 0 : index
    %90 = vector.load %arg6[%c0_52, %c0_53] : memref<1x128xf32, #tpu.memory_space<vmem>>, vector<1x128xf32>
    %91 = vector.broadcast %90 : vector<1x128xf32> to vector<64x128xf32>
    %92 = arith.addf %89, %91 : vector<64x128xf32>
    %cst_54 = arith.constant dense<0xFF800000> : vector<64xf32>
    %93 = vector.multi_reduction <maximumf>, %92, %cst_54 [1] : vector<64x128xf32> to vector<64xf32>
    %94 = vector.shape_cast %93 : vector<64xf32> to vector<64x1xf32>
    %95 = vector.broadcast %94 : vector<64x1xf32> to vector<64x128xf32>
    %96 = arith.subf %92, %95 : vector<64x128xf32>
    %97 = math.exp %96 : vector<64x128xf32>
    %cst_55 = arith.constant dense<0.000000e+00> : vector<64xf32>
    %98 = vector.multi_reduction <add>, %97, %cst_55 [1] : vector<64x128xf32> to vector<64xf32>
    %99 = vector.shape_cast %98 : vector<64xf32> to vector<64x1xf32>
    %100 = math.log %99 : vector<64x1xf32>
    %101 = vector.broadcast %100 : vector<64x1xf32> to vector<64x128xf32>
    %102 = arith.subf %96, %101 : vector<64x128xf32>
    %103 = vector.shape_cast %102 : vector<64x128xf32> to vector<8x8x128xf32>
    %c0_56 = arith.constant 0 : index
    %c0_57 = arith.constant 0 : index
    %c0_58 = arith.constant 0 : index
    %104 = vector.load %arg7[%c0_56, %c0_57, %c0_58] : memref<8x8x128xf32, #tpu.memory_space<vmem>>, vector<8x8x128xf32>
    tpu.vector_store %arg7[%c0_56, %c0_57, %c0_58], %103 {strides = array<i32>} : memref<8x8x128xf32, #tpu.memory_space<vmem>>, vector<8x8x128xf32>,
    return
  }
  func.func @transform_0(%arg0: i32, %arg1: i32) -> (i32, i32, i32) {
    %c0_i32 = arith.constant 0 : i32
    %c0_i32_0 = arith.constant 0 : i32
    return %arg1, %arg0, %c0_i32 : i32, i32, i32
  }
  func.func @transform_1(%arg0: i32, %arg1: i32) -> (i32, i32) {
    %c0_i32 = arith.constant 0 : i32
    %c0_i32_0 = arith.constant 0 : i32
    return %arg0, %c0_i32 : i32, i32
  }
  func.func @transform_2(%arg0: i32, %arg1: i32) -> (i32, i32) {
    %c0_i32 = arith.constant 0 : i32
    %c0_i32_0 = arith.constant 0 : i32
    %c0_i32_1 = arith.constant 0 : i32
    return %c0_i32, %c0_i32_0 : i32, i32
  }
  func.func @transform_3(%arg0: i32, %arg1: i32) -> (i32, i32) {
    %c0_i32 = arith.constant 0 : i32
    %c0_i32_0 = arith.constant 0 : i32
    %c0_i32_1 = arith.constant 0 : i32
    return %c0_i32, %c0_i32_0 : i32, i32
  }
  func.func @transform_4(%arg0: i32, %arg1: i32) -> (i32, i32) {
    %c0_i32 = arith.constant 0 : i32
    %c0_i32_0 = arith.constant 0 : i32
    %c0_i32_1 = arith.constant 0 : i32
    return %c0_i32, %c0_i32_0 : i32, i32
  }
  func.func @transform_5(%arg0: i32, %arg1: i32) -> (i32, i32, i32) {
    %c0_i32 = arith.constant 0 : i32
    %c0_i32_0 = arith.constant 0 : i32
    return %arg1, %arg0, %c0_i32 : i32, i32, i32
  }
  func.func @transform_6(%arg0: i32, %arg1: i32) -> (i32, i32) {
    %c0_i32 = arith.constant 0 : i32
    %c0_i32_0 = arith.constant 0 : i32
    return %arg0, %c0_i32 : i32, i32
  }
}

</mosaic_0001>

<bundles_post_ra>
// kernel: rnn_sequence_forward.2
= control target key start
LH: loop header
LB: loop body
LE: loop exit
PB: predicated region body
PF: predicated region fallthrough
CT: control target
= control target key end

     0   :  { %s382_s1 = inlined_call_operand.vmem [shape: f32[128,128], index: 1, kind: input, shape index: {}]   ;;  %s383_s0 = inlined_call_operand.vmem [shape: f32[64,128], index: 0, kind: input, shape index: {}]   ;;  %s384_s2 = inlined_call_operand.vmem [shape: f32[1,128], index: 2, kind: input, shape index: {}]   ;;  %s385_s3 = inlined_call_operand.vmem [shape: f32[64,128], index: 3, kind: output, shape index: {}]  }
   0x1   :  { %v37_v0 = vld [vmem:[%s382_s1 + $0x78] sm:$0xff]  ;;  %v36_v1 = vld [vmem:[%s382_s1 + $0x70] sm:$0xff]  ;;  %v35_v2 = vld [vmem:[%s382_s1 + $0x68] sm:$0xff] }
   0x2   :  { %187 = vmatprep.subr.mxu0 %v37_v0  ;;  %231 = vmatprep.subr.mxu1 %v37_v0  ;;  %v34_v3 = vld [vmem:[%s382_s1 + $0x60] sm:$0xff]  ;;  %v33_v4 = vld [vmem:[%s382_s1 + $0x58] sm:$0xff]  ;;  %v32_v5 = vld [vmem:[%s382_s1 + $0x50] sm:$0xff] }
   0x3   :  { %188 = vmatpush3.msra.mxu0 %v37_v0  ;;  %247 = vmatpush3.msra.mxu1 %v37_v0  ;;  %v31_v6 = vld [vmem:[%s382_s1 + $0x48] sm:$0xff]  ;;  %v30_v7 = vld [vmem:[%s382_s1 + $0x40] sm:$0xff]  ;;  %v29_v8 = vld [vmem:[%s382_s1 + $0x38] sm:$0xff] }
   0x4   :  { %189 = vmatprep.subr.mxu0 %v36_v1  ;;  %232 = vmatprep.subr.mxu1 %v36_v1  ;;  %v28_v9 = vld [vmem:[%s382_s1 + $0x30] sm:$0xff]  ;;  %v27_v10 = vld [vmem:[%s382_s1 + $0x28] sm:$0xff]  ;;  %v26_v11 = vld [vmem:[%s382_s1 + $0x20] sm:$0xff] }
   0x5   :  { %190 = vmatpush3.msra.mxu0 %v36_v1  ;;  %248 = vmatpush3.msra.mxu1 %v36_v1  ;;  %v25_v12 = vld [vmem:[%s382_s1 + $0x18] sm:$0xff]  ;;  %v24_v13 = vld [vmem:[%s382_s1 + $0x10] sm:$0xff]  ;;  %v23_v14 = vld [vmem:[%s382_s1 + $0x8] sm:$0xff] }
   0x6   :  { %191 = vmatprep.subr.mxu0 %v35_v2  ;;  %233 = vmatprep.subr.mxu1 %v35_v2  ;;  %v22_v15 = vld [vmem:[%s382_s1] sm:$0xff]  ;;  %v15_v18 = vld [vmem:[%s383_s0 + $0x8] sm:$0xff]  ;;  %v16_v20 = vld [vmem:[%s383_s0 + $0x10] sm:$0xff] }
   0x7   :  { %192 = vmatpush3.msra.mxu0 %v35_v2  ;;  %249 = vmatpush3.msra.mxu1 %v35_v2  ;;  %v14_v16 = vld [vmem:[%s383_s0] sm:$0xff]  ;;  %v19_v19 = vld [vmem:[%s383_s0 + $0x28] sm:$0xff]  ;;  %v20_v21 = vld [vmem:[%s383_s0 + $0x30] sm:$0xff] }
   0x8   :  { %193 = vmatprep.subr.mxu0 %v34_v3  ;;  %234 = vmatprep.subr.mxu1 %v34_v3  ;;  %v18_v17 = vld [vmem:[%s383_s0 + $0x20] sm:$0xff]  ;;  %v17_v22 = vld [vmem:[%s383_s0 + $0x18] sm:$0xff] }
   0x9   :  { %194 = vmatpush3.msra.mxu0 %v34_v3  ;;  %250 = vmatpush3.msra.mxu1 %v34_v3  ;;  %v21_v23 = vld [vmem:[%s383_s0 + $0x38] sm:$0xff]  ;;  %v162_v24 = vld [vmem:[%s384_s2] ss:$0 sm:$0xff] }
   0xa   :  { %195 = vmatprep.subr.mxu0 %v33_v4  ;;  %235 = vmatprep.subr.mxu1 %v33_v4 }
   0xb   :  { %196 = vmatpush3.msra.mxu0 %v33_v4  ;;  %251 = vmatpush3.msra.mxu1 %v33_v4 }
   0xc   :  { %197 = vmatprep.subr.mxu0 %v32_v5  ;;  %236 = vmatprep.subr.mxu1 %v32_v5 }
   0xd   :  { %198 = vmatpush3.msra.mxu0 %v32_v5  ;;  %252 = vmatpush3.msra.mxu1 %v32_v5 }
   0xe   :  { %199 = vmatprep.subr.mxu0 %v31_v6  ;;  %237 = vmatprep.subr.mxu1 %v31_v6 }
   0xf   :  { %200 = vmatpush3.msra.mxu0 %v31_v6  ;;  %253 = vmatpush3.msra.mxu1 %v31_v6 }
  0x10   :  { %201 = vmatprep.subr.mxu0 %v30_v7  ;;  %238 = vmatprep.subr.mxu1 %v30_v7 }
  0x11   :  { %202 = vmatpush3.msra.mxu0 %v30_v7  ;;  %254 = vmatpush3.msra.mxu1 %v30_v7 }
  0x12   :  { %203 = vmatprep.subr.mxu0 %v29_v8  ;;  %239 = vmatprep.subr.mxu1 %v29_v8 }
  0x13   :  { %204 = vmatpush3.msra.mxu0 %v29_v8  ;;  %255 = vmatpush3.msra.mxu1 %v29_v8 }
  0x14   :  { %205 = vmatprep.subr.mxu0 %v28_v9  ;;  %240 = vmatprep.subr.mxu1 %v28_v9 }
  0x15   :  { %206 = vmatpush3.msra.mxu0 %v28_v9  ;;  %256 = vmatpush3.msra.mxu1 %v28_v9 }
  0x16   :  { %207 = vmatprep.subr.mxu0 %v27_v10  ;;  %241 = vmatprep.subr.mxu1 %v27_v10 }
  0x17   :  { %208 = vmatpush3.msra.mxu0 %v27_v10  ;;  %257 = vmatpush3.msra.mxu1 %v27_v10 }
  0x18   :  { %209 = vmatprep.subr.mxu0 %v26_v11  ;;  %242 = vmatprep.subr.mxu1 %v26_v11 }
  0x19   :  { %210 = vmatpush3.msra.mxu0 %v26_v11  ;;  %258 = vmatpush3.msra.mxu1 %v26_v11 }
  0x1a   :  { %211 = vmatprep.subr.mxu0 %v25_v12  ;;  %243 = vmatprep.subr.mxu1 %v25_v12 }
  0x1b   :  { %212 = vmatpush3.msra.mxu0 %v25_v12  ;;  %259 = vmatpush3.msra.mxu1 %v25_v12 }
  0x1c   :  { %213 = vmatprep.subr.mxu0 %v24_v13  ;;  %244 = vmatprep.subr.mxu1 %v24_v13 }
  0x1d   :  { %214 = vmatpush3.msra.mxu0 %v24_v13  ;;  %260 = vmatpush3.msra.mxu1 %v24_v13 }
  0x1e   :  { %215 = vmatprep.subr.mxu0 %v23_v14  ;;  %245 = vmatprep.subr.mxu1 %v23_v14 }
  0x1f   :  { %216 = vmatpush3.msra.mxu0 %v23_v14  ;;  %261 = vmatpush3.msra.mxu1 %v23_v14 }
  0x20   :  { %217 = vmatprep.subr.mxu0 %v22_v15  ;;  %246 = vmatprep.subr.mxu1 %v22_v15 }
  0x21   :  { %218 = vmatpush3.msra.mxu0 %v22_v15  ;;  %262 = vmatpush3.msra.mxu1 %v22_v15 }
  0x22   :  { %219 = vmatprep.mubr.f32.mxu0 %v14_v16  ;;  %225 = vmatprep.mubr.f32.mxu1 %v18_v17 }
  0x23   :  { %220 = vmatmul.mubr.f32.vlgmr.msra.gmra.mxu0 %v15_v18  ;;  %226 = vmatmul.mubr.f32.vlgmr.msra.gmra.mxu1 %v19_v19 }
  0x24   :  { %222 = vmatprep.mubr.f32.mxu0 %v16_v20  ;;  %228 = vmatprep.mubr.f32.mxu1 %v20_v21 }
  0x27   :  { %223 = vmatmul.mubr.f32.gmra.mxu0 %v17_v22  ;;  %229 = vmatmul.mubr.f32.gmra.mxu1 %v21_v23 }
  0xe3   :  { %v221_v25 = vpop.f32.mrf.mxu0  ;;  %v227_v26 = vpop.f32.mrf.mxu1 }
  0xe4   :  { %v117_v27 = vadd.f32 %v221_v25, %v162_v24  ;;  %v137_v28 = vadd.f32 %v227_v26, %v162_v24 }
  0xe5   :  { %v111_v29 = vpop.f32.mrf.mxu0  ;;  %v131_v30 = vpop.f32.mrf.mxu1 }
  0xe6   :  { %151 = vst [vmem:[%s385_s3 + $0x8] sm:$0xff] %v117_v27  ;;  %155 = vst [vmem:[%s385_s3 + $0x28] sm:$0xff] %v137_v28  ;;  %v112_v31 = vadd.f32 %v162_v24, %v111_v29  ;;  %v132_v32 = vadd.f32 %v162_v24, %v131_v30 }
  0xe7   :  { %v224_v33 = vpop.f32.mrf.mxu0  ;;  %v230_v34 = vpop.f32.mrf.mxu1 }
  0xe8   :  { %150 = vst [vmem:[%s385_s3] sm:$0xff] %v112_v31  ;;  %154 = vst [vmem:[%s385_s3 + $0x20] sm:$0xff] %v132_v32  ;;  %v127_v35 = vadd.f32 %v224_v33, %v162_v24  ;;  %v147_v36 = vadd.f32 %v230_v34, %v162_v24 }
  0xe9   :  { %v121_v37 = vpop.f32.mrf.mxu0  ;;  %v141_v38 = vpop.f32.mrf.mxu1 }
  0xea   :  { %153 = vst [vmem:[%s385_s3 + $0x18] sm:$0xff] %v127_v35  ;;  %157 = vst [vmem:[%s385_s3 + $0x38] sm:$0xff] %v147_v36  ;;  %v122_v39 = vadd.f32 %v162_v24, %v121_v37  ;;  %v142_v40 = vadd.f32 %v162_v24, %v141_v38 }
  0xec   :  { %152 = vst [vmem:[%s385_s3 + $0x10] sm:$0xff] %v122_v39  ;;  %156 = vst [vmem:[%s385_s3 + $0x30] sm:$0xff] %v142_v40 }

// kernel: rnn_sequence_forward.3
= control target key start
LH: loop header
LB: loop body
LE: loop exit
PB: predicated region body
PF: predicated region fallthrough
CT: control target
= control target key end

     0   :  { %v1426_v0 = vmov 0.0   ;;  %vm1427_vm0 = vmmov 0   ;;  %s1964_s2 = inlined_call_operand.vmem [shape: f32[128,128], index: 2, kind: input, shape index: {}]   ;;  %s1965_s1 = inlined_call_operand.vmem [shape: f32[8,128], index: 1, kind: input, shape index: {}]   ;;  %s1966_s0 = inlined_call_operand.vmem [shape: f32[8,8,128], index: 0, kind: input, shape index: {}]   ;;  %s1967_s3 = inlined_call_operand.vmem [shape: f32[128,128], index: 3, kind: input, shape index: {}]   ;;  %s1968_s4 = inlined_call_operand.vmem [shape: f32[1,128], index: 4, kind: input, shape index: {}]   ;;  %s1969_s6 = inlined_call_operand.vmem [shape: f32[8,128], index: 6, kind: output, shape index: {1}]   ;;  %s1970_s5 = inlined_call_operand.vmem [shape: f32[8,8,128], index: 5, kind: output, shape index: {0}]  }
   0x1   :  { %1052 = vmatprep.subr.mxu1 %v1426_v0  ;;  %v1467_v1 = vld [vmem:[%s1964_s2 + $0x78] sm:$0xff]  ;;  %v1472_v2 = vld [vmem:[%s1964_s2 + $0x70] sm:$0xff]  ;;  %1084 = vmatprep.mubr.msk.f32.mxu1 %vm1427_vm0, %v1426_v0  ;;  %v1482_v3 = vld [vmem:[%s1964_s2 + $0x68] sm:$0xff] }
   0x2   :  { %1053 = vmatpush3.msra.mxu1 %v1467_v1  ;;  %1122 = vmatprep.subr.mxu0 %v1426_v0  ;;  %v1491_v4 = vld [vmem:[%s1964_s2 + $0x60] sm:$0xff]  ;;  %v1500_v5 = vld [vmem:[%s1964_s2 + $0x58] sm:$0xff]  ;;  %v1509_v6 = vld [vmem:[%s1964_s2 + $0x50] sm:$0xff] }
   0x3   :  { %1054 = vmatprep.subr.mxu1 %v1426_v0  ;;  %1123 = vmatpush3.msra.mxu0 %v1467_v1  ;;  %v1518_v7 = vld [vmem:[%s1964_s2 + $0x48] sm:$0xff]  ;;  %v1527_v8 = vld [vmem:[%s1964_s2 + $0x40] sm:$0xff]  ;;  %v1536_v9 = vld [vmem:[%s1964_s2 + $0x38] sm:$0xff] }
   0x4   :  { %1055 = vmatpush3.msra.mxu1 %v1472_v2  ;;  %1124 = vmatprep.subr.mxu0 %v1426_v0  ;;  %v1545_v10 = vld [vmem:[%s1964_s2 + $0x30] sm:$0xff]  ;;  %v1554_v11 = vld [vmem:[%s1964_s2 + $0x28] sm:$0xff]  ;;  %v1563_v12 = vld [vmem:[%s1964_s2 + $0x20] sm:$0xff] }
   0x5   :  { %1056 = vmatprep.subr.mxu1 %v1426_v0  ;;  %1125 = vmatpush3.msra.mxu0 %v1472_v2  ;;  %v1572_v13 = vld [vmem:[%s1964_s2 + $0x18] sm:$0xff]  ;;  %v1581_v14 = vld [vmem:[%s1964_s2 + $0x10] sm:$0xff]  ;;  %v1590_v15 = vld [vmem:[%s1964_s2 + $0x8] sm:$0xff] }
   0x6   :  { %1057 = vmatpush3.msra.mxu1 %v1482_v3  ;;  %1126 = vmatprep.subr.mxu0 %v1426_v0  ;;  %v1599_v16 = vld [vmem:[%s1964_s2] sm:$0xff]  ;;  %v884_v23 = vld [vmem:[%s1966_s0 + $0x8] sm:$0xff]  ;;  %v885_v28 = vld [vmem:[%s1966_s0 + $0x10] sm:$0xff] }
   0x7   :  { %1058 = vmatprep.subr.mxu1 %v1426_v0  ;;  %1127 = vmatpush3.msra.mxu0 %v1482_v3  ;;  %v26_v17 = vld [vmem:[%s1965_s1] sm:$0xff]  ;;  %v886_v33 = vld [vmem:[%s1966_s0 + $0x18] sm:$0xff]  ;;  %v888_v44 = vld [vmem:[%s1966_s0 + $0x28] sm:$0xff] }
   0x8   :  { %1059 = vmatpush3.msra.mxu1 %v1491_v4  ;;  %1128 = vmatprep.subr.mxu0 %v1426_v0  ;;  %v45_v18 = vld [vmem:[%s1966_s0] sm:$0xff]  ;;  %v675_v43 = vld [vmem:[%s1967_s3 + $0x78] sm:$0xff]  ;;  %v674_v49 = vld [vmem:[%s1967_s3 + $0x70] sm:$0xff] }
   0x9   :  { %1060 = vmatprep.subr.mxu1 %v1426_v0  ;;  %1129 = vmatpush3.msra.mxu0 %v1491_v4  ;;  %v887_v38 = vld [vmem:[%s1966_s0 + $0x20] sm:$0xff]  ;;  %v673_v50 = vld [vmem:[%s1967_s3 + $0x68] sm:$0xff]  ;;  %v671_v52 = vld [vmem:[%s1967_s3 + $0x58] sm:$0xff] }
   0xa   :  { %1061 = vmatpush3.msra.mxu1 %v1500_v5  ;;  %1130 = vmatprep.subr.mxu0 %v1426_v0  ;;  %v672_v51 = vld [vmem:[%s1967_s3 + $0x60] sm:$0xff]  ;;  %v670_v53 = vld [vmem:[%s1967_s3 + $0x50] sm:$0xff]  ;;  %v669_v54 = vld [vmem:[%s1967_s3 + $0x48] sm:$0xff] }
   0xb   :  { %1062 = vmatprep.subr.mxu1 %v1426_v0  ;;  %1131 = vmatpush3.msra.mxu0 %v1500_v5  ;;  %v668_v55 = vld [vmem:[%s1967_s3 + $0x40] sm:$0xff]  ;;  %v667_v56 = vld [vmem:[%s1967_s3 + $0x38] sm:$0xff]  ;;  %v666_v57 = vld [vmem:[%s1967_s3 + $0x30] sm:$0xff] }
   0xc   :  { %1063 = vmatpush3.msra.mxu1 %v1509_v6  ;;  %1132 = vmatprep.subr.mxu0 %v1426_v0  ;;  %v665_v58 = vld [vmem:[%s1967_s3 + $0x28] sm:$0xff]  ;;  %v664_v59 = vld [vmem:[%s1967_s3 + $0x20] sm:$0xff]  ;;  %v663_v60 = vld [vmem:[%s1967_s3 + $0x18] sm:$0xff] }
   0xd   :  { %1064 = vmatprep.subr.mxu1 %v1426_v0  ;;  %1133 = vmatpush3.msra.mxu0 %v1509_v6  ;;  %v662_v61 = vld [vmem:[%s1967_s3 + $0x10] sm:$0xff]  ;;  %v661_v62 = vld [vmem:[%s1967_s3 + $0x8] sm:$0xff]  ;;  %v660_v63 = vld [vmem:[%s1967_s3] sm:$0xff] }
   0xe   :  { %1065 = vmatpush3.msra.mxu1 %v1518_v7  ;;  %1134 = vmatprep.subr.mxu0 %v1426_v0 }
   0xf   :  { %1066 = vmatprep.subr.mxu1 %v1426_v0  ;;  %1135 = vmatpush3.msra.mxu0 %v1518_v7 }
  0x10   :  { %1067 = vmatpush3.msra.mxu1 %v1527_v8  ;;  %1136 = vmatprep.subr.mxu0 %v1426_v0 }
  0x11   :  { %1068 = vmatprep.subr.mxu1 %v1426_v0  ;;  %1137 = vmatpush3.msra.mxu0 %v1527_v8 }
  0x12   :  { %1069 = vmatpush3.msra.mxu1 %v1536_v9  ;;  %1138 = vmatprep.subr.mxu0 %v1426_v0 }
  0x13   :  { %1070 = vmatprep.subr.mxu1 %v1426_v0  ;;  %1139 = vmatpush3.msra.mxu0 %v1536_v9 }
  0x14   :  { %1071 = vmatpush3.msra.mxu1 %v1545_v10  ;;  %1140 = vmatprep.subr.mxu0 %v1426_v0 }
  0x15   :  { %1072 = vmatprep.subr.mxu1 %v1426_v0  ;;  %1141 = vmatpush3.msra.mxu0 %v1545_v10 }
  0x16   :  { %1073 = vmatpush3.msra.mxu1 %v1554_v11  ;;  %1142 = vmatprep.subr.mxu0 %v1426_v0 }
  0x17   :  { %1074 = vmatprep.subr.mxu1 %v1426_v0  ;;  %1143 = vmatpush3.msra.mxu0 %v1554_v11 }
  0x18   :  { %1075 = vmatpush3.msra.mxu1 %v1563_v12  ;;  %1144 = vmatprep.subr.mxu0 %v1426_v0 }
  0x19   :  { %1076 = vmatprep.subr.mxu1 %v1426_v0  ;;  %1145 = vmatpush3.msra.mxu0 %v1563_v12 }
  0x1a   :  { %1077 = vmatpush3.msra.mxu1 %v1572_v13  ;;  %1146 = vmatprep.subr.mxu0 %v1426_v0 }
  0x1b   :  { %1078 = vmatprep.subr.mxu1 %v1426_v0  ;;  %1147 = vmatpush3.msra.mxu0 %v1572_v13 }
  0x1c   :  { %1079 = vmatpush3.msra.mxu1 %v1581_v14  ;;  %1148 = vmatprep.subr.mxu0 %v1426_v0 }
  0x1d   :  { %1080 = vmatprep.subr.mxu1 %v1426_v0  ;;  %1149 = vmatpush3.msra.mxu0 %v1581_v14 }
  0x1e   :  { %1081 = vmatpush3.msra.mxu1 %v1590_v15  ;;  %1150 = vmatprep.subr.mxu0 %v1426_v0 }
  0x1f   :  { %1082 = vmatprep.subr.mxu1 %v1426_v0  ;;  %1151 = vmatpush3.msra.mxu0 %v1590_v15 }
  0x20   :  { %1083 = vmatpush3.msra.mxu1 %v1599_v16  ;;  %1152 = vmatprep.subr.mxu0 %v1426_v0 }
  0x21   :  { %1085 = vmatmul.mubr.f32.vlgmr.msra.gmra.mxu1 %v26_v17  ;;  %1087 = vmatprep.subr.mxu1 %v1426_v0 }
  0x22   :  { %1088 = vmatpush3.msra.mxu1 %v1467_v1  ;;  %1119 = vmatprep.mubr.msk.f32.mxu1 %vm1427_vm0, %v1426_v0 }
  0x23   :  { %1089 = vmatprep.subr.mxu1 %v1426_v0  ;;  %1153 = vmatpush3.msra.mxu0 %v1599_v16 }
  0x24   :  { %1090 = vmatpush3.msra.mxu1 %v1472_v2  ;;  %1154 = vmatprep.mubr.msk.f32.mxu0 %vm1427_vm0, %v1426_v0 }
  0x25   :  { %1091 = vmatprep.subr.mxu1 %v1426_v0  ;;  %1192 = vmatprep.subr.mxu0 %v1426_v0 }
  0x26   :  { %1092 = vmatpush3.msra.mxu1 %v1482_v3 }
  0x27   :  { %1093 = vmatprep.subr.mxu1 %v1426_v0 }
  0x28   :  { %1094 = vmatpush3.msra.mxu1 %v1491_v4 }
  0x29   :  { %1095 = vmatprep.subr.mxu1 %v1426_v0 }
  0x2a   :  { %1096 = vmatpush3.msra.mxu1 %v1500_v5 }
  0x2b   :  { %1097 = vmatprep.subr.mxu1 %v1426_v0 }
  0x2c   :  { %1098 = vmatpush3.msra.mxu1 %v1509_v6 }
  0x2d   :  { %1099 = vmatprep.subr.mxu1 %v1426_v0 }
  0x2e   :  { %1100 = vmatpush3.msra.mxu1 %v1518_v7 }
  0x2f   :  { %1101 = vmatprep.subr.mxu1 %v1426_v0 }
  0x30   :  { %1102 = vmatpush3.msra.mxu1 %v1527_v8 }
  0x31   :  { %1103 = vmatprep.subr.mxu1 %v1426_v0 }
  0x32   :  { %1104 = vmatpush3.msra.mxu1 %v1536_v9 }
  0x33   :  { %1105 = vmatprep.subr.mxu1 %v1426_v0 }
  0x34   :  { %1106 = vmatpush3.msra.mxu1 %v1545_v10 }
  0x35   :  { %1107 = vmatprep.subr.mxu1 %v1426_v0 }
  0x36   :  { %1108 = vmatpush3.msra.mxu1 %v1554_v11 }
  0x37   :  { %1109 = vmatprep.subr.mxu1 %v1426_v0 }
  0x38   :  { %1110 = vmatpush3.msra.mxu1 %v1563_v12 }
  0x39   :  { %1111 = vmatprep.subr.mxu1 %v1426_v0 }
  0x3a   :  { %1112 = vmatpush3.msra.mxu1 %v1572_v13 }
  0x3b   :  { %1113 = vmatprep.subr.mxu1 %v1426_v0 }
  0x3c   :  { %1114 = vmatpush3.msra.mxu1 %v1581_v14 }
  0x3d   :  { %1115 = vmatprep.subr.mxu1 %v1426_v0 }
  0x3e   :  { %1116 = vmatpush3.msra.mxu1 %v1590_v15 }
  0x3f   :  { %1117 = vmatprep.subr.mxu1 %v1426_v0 }
  0x40   :  { %1118 = vmatpush3.msra.mxu1 %v1599_v16 }
  0x41   :  { %1157 = vmatprep.subr.mxu1 %v1426_v0 }
  0xe1   :  { %v112_v19 = vpop.f32.mrf.mxu1 }
  0xe2   :  { %v116_v20 = vadd.f32 %v112_v19, %v45_v18  ;;  %v890_v18 = vld [vmem:[%s1966_s0 + $0x38] sm:$0xff] }
  0xe3   :  { %v1086_v21 = vpop.f32.mrf.mxu1 }
  0xe4   :  { %1378 = vtanh.f32 %v116_v20 }
  0xf1   :  { %v1653_v22 = vpop.eup %1378 }
  0xf2   :  { %1120 = vmatmul.mubr.f32.vlgmr.msra.gmra.mxu1 %v1653_v22 }
  0xf3   :  { %1158 = vmatpush3.msra.mxu1 %v1467_v1  ;;  %1189 = vmatprep.mubr.msk.f32.mxu1 %vm1427_vm0, %v1426_v0 }
  0xf4   :  { %1159 = vmatprep.subr.mxu1 %v1426_v0 }
  0xf5   :  { %1160 = vmatpush3.msra.mxu1 %v1472_v2 }
  0xf6   :  { %1161 = vmatprep.subr.mxu1 %v1426_v0 }
  0xf7   :  { %1162 = vmatpush3.msra.mxu1 %v1482_v3 }
  0xf8   :  { %1163 = vmatprep.subr.mxu1 %v1426_v0 }
  0xf9   :  { %1164 = vmatpush3.msra.mxu1 %v1491_v4 }
  0xfa   :  { %1165 = vmatprep.subr.mxu1 %v1426_v0 }
  0xfb   :  { %1166 = vmatpush3.msra.mxu1 %v1500_v5 }
  0xfc   :  { %1167 = vmatprep.subr.mxu1 %v1426_v0 }
  0xfd   :  { %1168 = vmatpush3.msra.mxu1 %v1509_v6 }
  0xfe   :  { %1169 = vmatprep.subr.mxu1 %v1426_v0 }
  0xff   :  { %1170 = vmatpush3.msra.mxu1 %v1518_v7 }
 0x100   :  { %1171 = vmatprep.subr.mxu1 %v1426_v0 }
 0x101   :  { %1172 = vmatpush3.msra.mxu1 %v1527_v8 }
 0x102   :  { %1173 = vmatprep.subr.mxu1 %v1426_v0 }
 0x103   :  { %1174 = vmatpush3.msra.mxu1 %v1536_v9 }
 0x104   :  { %1175 = vmatprep.subr.mxu1 %v1426_v0 }
 0x105   :  { %1176 = vmatpush3.msra.mxu1 %v1545_v10 }
 0x106   :  { %1177 = vmatprep.subr.mxu1 %v1426_v0 }
 0x107   :  { %1178 = vmatpush3.msra.mxu1 %v1554_v11 }
 0x108   :  { %1179 = vmatprep.subr.mxu1 %v1426_v0 }
 0x109   :  { %1180 = vmatpush3.msra.mxu1 %v1563_v12 }
 0x10a   :  { %1181 = vmatprep.subr.mxu1 %v1426_v0 }
 0x10b   :  { %1182 = vmatpush3.msra.mxu1 %v1572_v13 }
 0x10c   :  { %1183 = vmatprep.subr.mxu1 %v1426_v0 }
 0x10d   :  { %1184 = vmatpush3.msra.mxu1 %v1581_v14 }
 0x10e   :  { %1185 = vmatprep.subr.mxu1 %v1426_v0 }
 0x10f   :  { %1186 = vmatpush3.msra.mxu1 %v1590_v15 }
 0x110   :  { %1187 = vmatprep.subr.mxu1 %v1426_v0 }
 0x111   :  { %1188 = vmatpush3.msra.mxu1 %v1599_v16 }
 0x112   :  { %1227 = vmatprep.subr.mxu1 %v1426_v0 }
 0x1b2   :  { %v187_v24 = vpop.f32.mrf.mxu1 }
 0x1b3   :  { %v191_v25 = vadd.f32 %v884_v23, %v187_v24 }
 0x1b4   :  { %v1121_v26 = vpop.f32.mrf.mxu1 }
 0x1b5   :  { %1380 = vtanh.f32 %v191_v25 }
 0x1c2   :  { %v1693_v27 = vpop.eup %1380 }
 0x1c3   :  { %1155 = vmatmul.mubr.f32.vlgmr.msra.gmra.mxu0 %v1693_v27 }
 0x1c4   :  { %1193 = vmatpush3.msra.mxu0 %v1467_v1  ;;  %1224 = vmatprep.mubr.msk.f32.mxu0 %vm1427_vm0, %v1426_v0 }
 0x1c5   :  { %1194 = vmatprep.subr.mxu0 %v1426_v0 }
 0x1c6   :  { %1195 = vmatpush3.msra.mxu0 %v1472_v2 }
 0x1c7   :  { %1196 = vmatprep.subr.mxu0 %v1426_v0 }
 0x1c8   :  { %1197 = vmatpush3.msra.mxu0 %v1482_v3 }
 0x1c9   :  { %1198 = vmatprep.subr.mxu0 %v1426_v0 }
 0x1ca   :  { %1199 = vmatpush3.msra.mxu0 %v1491_v4 }
 0x1cb   :  { %1200 = vmatprep.subr.mxu0 %v1426_v0 }
 0x1cc   :  { %1201 = vmatpush3.msra.mxu0 %v1500_v5 }
 0x1cd   :  { %1202 = vmatprep.subr.mxu0 %v1426_v0 }
 0x1ce   :  { %1203 = vmatpush3.msra.mxu0 %v1509_v6 }
 0x1cf   :  { %1204 = vmatprep.subr.mxu0 %v1426_v0 }
 0x1d0   :  { %1205 = vmatpush3.msra.mxu0 %v1518_v7 }
 0x1d1   :  { %1206 = vmatprep.subr.mxu0 %v1426_v0 }
 0x1d2   :  { %1207 = vmatpush3.msra.mxu0 %v1527_v8 }
 0x1d3   :  { %1208 = vmatprep.subr.mxu0 %v1426_v0 }
 0x1d4   :  { %1209 = vmatpush3.msra.mxu0 %v1536_v9 }
 0x1d5   :  { %1210 = vmatprep.subr.mxu0 %v1426_v0 }
 0x1d6   :  { %1211 = vmatpush3.msra.mxu0 %v1545_v10 }
 0x1d7   :  { %1212 = vmatprep.subr.mxu0 %v1426_v0 }
 0x1d8   :  { %1213 = vmatpush3.msra.mxu0 %v1554_v11 }
 0x1d9   :  { %1214 = vmatprep.subr.mxu0 %v1426_v0 }
 0x1da   :  { %1215 = vmatpush3.msra.mxu0 %v1563_v12 }
 0x1db   :  { %1216 = vmatprep.subr.mxu0 %v1426_v0 }
 0x1dc   :  { %1217 = vmatpush3.msra.mxu0 %v1572_v13 }
 0x1dd   :  { %1218 = vmatprep.subr.mxu0 %v1426_v0 }
 0x1de   :  { %1219 = vmatpush3.msra.mxu0 %v1581_v14 }
 0x1df   :  { %1220 = vmatprep.subr.mxu0 %v1426_v0 }
 0x1e0   :  { %1221 = vmatpush3.msra.mxu0 %v1590_v15 }
 0x1e1   :  { %1222 = vmatprep.subr.mxu0 %v1426_v0 }
 0x1e2   :  { %1223 = vmatpush3.msra.mxu0 %v1599_v16 }
 0x1e3   :  { %1262 = vmatprep.subr.mxu0 %v1426_v0 }
 0x283   :  { %v263_v29 = vpop.f32.mrf.mxu0 }
 0x284   :  { %v267_v30 = vadd.f32 %v885_v28, %v263_v29 }
 0x285   :  { %v1156_v31 = vpop.f32.mrf.mxu0 }
 0x286   :  { %1382 = vtanh.f32 %v267_v30 }
 0x293   :  { %v1733_v32 = vpop.eup %1382 }
 0x294   :  { %1190 = vmatmul.mubr.f32.vlgmr.msra.gmra.mxu1 %v1733_v32 }
 0x295   :  { %1228 = vmatpush3.msra.mxu1 %v1467_v1  ;;  %1259 = vmatprep.mubr.msk.f32.mxu1 %vm1427_vm0, %v1426_v0 }
 0x296   :  { %1229 = vmatprep.subr.mxu1 %v1426_v0 }
 0x297   :  { %1230 = vmatpush3.msra.mxu1 %v1472_v2 }
 0x298   :  { %1231 = vmatprep.subr.mxu1 %v1426_v0 }
 0x299   :  { %1232 = vmatpush3.msra.mxu1 %v1482_v3 }
 0x29a   :  { %1233 = vmatprep.subr.mxu1 %v1426_v0 }
 0x29b   :  { %1234 = vmatpush3.msra.mxu1 %v1491_v4 }
 0x29c   :  { %1235 = vmatprep.subr.mxu1 %v1426_v0 }
 0x29d   :  { %1236 = vmatpush3.msra.mxu1 %v1500_v5 }
 0x29e   :  { %1237 = vmatprep.subr.mxu1 %v1426_v0 }
 0x29f   :  { %1238 = vmatpush3.msra.mxu1 %v1509_v6 }
 0x2a0   :  { %1239 = vmatprep.subr.mxu1 %v1426_v0 }
 0x2a1   :  { %1240 = vmatpush3.msra.mxu1 %v1518_v7 }
 0x2a2   :  { %1241 = vmatprep.subr.mxu1 %v1426_v0 }
 0x2a3   :  { %1242 = vmatpush3.msra.mxu1 %v1527_v8 }
 0x2a4   :  { %1243 = vmatprep.subr.mxu1 %v1426_v0 }
 0x2a5   :  { %1244 = vmatpush3.msra.mxu1 %v1536_v9 }
 0x2a6   :  { %1245 = vmatprep.subr.mxu1 %v1426_v0 }
 0x2a7   :  { %1246 = vmatpush3.msra.mxu1 %v1545_v10 }
 0x2a8   :  { %1247 = vmatprep.subr.mxu1 %v1426_v0 }
 0x2a9   :  { %1248 = vmatpush3.msra.mxu1 %v1554_v11 }
 0x2aa   :  { %1249 = vmatprep.subr.mxu1 %v1426_v0 }
 0x2ab   :  { %1250 = vmatpush3.msra.mxu1 %v1563_v12 }
 0x2ac   :  { %1251 = vmatprep.subr.mxu1 %v1426_v0 }
 0x2ad   :  { %1252 = vmatpush3.msra.mxu1 %v1572_v13 }
 0x2ae   :  { %1253 = vmatprep.subr.mxu1 %v1426_v0 }
 0x2af   :  { %1254 = vmatpush3.msra.mxu1 %v1581_v14 }
 0x2b0   :  { %1255 = vmatprep.subr.mxu1 %v1426_v0 }
 0x2b1   :  { %1256 = vmatpush3.msra.mxu1 %v1590_v15 }
 0x2b2   :  { %1257 = vmatprep.subr.mxu1 %v1426_v0 }
 0x2b3   :  { %1258 = vmatpush3.msra.mxu1 %v1599_v16 }
 0x2b4   :  { %1297 = vmatprep.subr.mxu1 %v1426_v0 }
 0x354   :  { %v339_v34 = vpop.f32.mrf.mxu1 }
 0x355   :  { %v343_v35 = vadd.f32 %v886_v33, %v339_v34 }
 0x356   :  { %v1191_v36 = vpop.f32.mrf.mxu1 }
 0x357   :  { %1384 = vtanh.f32 %v343_v35 }
 0x364   :  { %v1773_v37 = vpop.eup %1384 }
 0x365   :  { %1225 = vmatmul.mubr.f32.vlgmr.msra.gmra.mxu0 %v1773_v37 }
 0x366   :  { %1263 = vmatpush3.msra.mxu0 %v1467_v1  ;;  %1294 = vmatprep.mubr.msk.f32.mxu0 %vm1427_vm0, %v1426_v0 }
 0x367   :  { %1264 = vmatprep.subr.mxu0 %v1426_v0 }
 0x368   :  { %1265 = vmatpush3.msra.mxu0 %v1472_v2 }
 0x369   :  { %1266 = vmatprep.subr.mxu0 %v1426_v0 }
 0x36a   :  { %1267 = vmatpush3.msra.mxu0 %v1482_v3 }
 0x36b   :  { %1268 = vmatprep.subr.mxu0 %v1426_v0 }
 0x36c   :  { %1269 = vmatpush3.msra.mxu0 %v1491_v4 }
 0x36d   :  { %1270 = vmatprep.subr.mxu0 %v1426_v0 }
 0x36e   :  { %1271 = vmatpush3.msra.mxu0 %v1500_v5 }
 0x36f   :  { %1272 = vmatprep.subr.mxu0 %v1426_v0 }
 0x370   :  { %1273 = vmatpush3.msra.mxu0 %v1509_v6 }
 0x371   :  { %1274 = vmatprep.subr.mxu0 %v1426_v0 }
 0x372   :  { %1275 = vmatpush3.msra.mxu0 %v1518_v7 }
 0x373   :  { %1276 = vmatprep.subr.mxu0 %v1426_v0 }
 0x374   :  { %1277 = vmatpush3.msra.mxu0 %v1527_v8 }
 0x375   :  { %1278 = vmatprep.subr.mxu0 %v1426_v0 }
 0x376   :  { %1279 = vmatpush3.msra.mxu0 %v1536_v9 }
 0x377   :  { %1280 = vmatprep.subr.mxu0 %v1426_v0 }
 0x378   :  { %1281 = vmatpush3.msra.mxu0 %v1545_v10 }
 0x379   :  { %1282 = vmatprep.subr.mxu0 %v1426_v0 }
 0x37a   :  { %1283 = vmatpush3.msra.mxu0 %v1554_v11 }
 0x37b   :  { %1284 = vmatprep.subr.mxu0 %v1426_v0 }
 0x37c   :  { %1285 = vmatpush3.msra.mxu0 %v1563_v12 }
 0x37d   :  { %1286 = vmatprep.subr.mxu0 %v1426_v0 }
 0x37e   :  { %1287 = vmatpush3.msra.mxu0 %v1572_v13 }
 0x37f   :  { %1288 = vmatprep.subr.mxu0 %v1426_v0 }
 0x380   :  { %1289 = vmatpush3.msra.mxu0 %v1581_v14 }
 0x381   :  { %1290 = vmatprep.subr.mxu0 %v1426_v0 }
 0x382   :  { %1291 = vmatpush3.msra.mxu0 %v1590_v15 }
 0x383   :  { %1292 = vmatprep.subr.mxu0 %v1426_v0 }
 0x384   :  { %1293 = vmatpush3.msra.mxu0 %v1599_v16 }
 0x385   :  { %1332 = vmatprep.subr.mxu0 %v675_v43 }
 0x425   :  { %v415_v39 = vpop.f32.mrf.mxu0 }
 0x426   :  { %v419_v40 = vadd.f32 %v887_v38, %v415_v39 }
 0x427   :  { %v1226_v41 = vpop.f32.mrf.mxu0 }
 0x428   :  { %1386 = vtanh.f32 %v419_v40 }
 0x435   :  { %v1812_v42 = vpop.eup %1386 }
 0x436   :  { %1260 = vmatmul.mubr.f32.vlgmr.msra.gmra.mxu1 %v1812_v42 }
 0x437   :  { %1298 = vmatpush3.msra.mxu1 %v1467_v1  ;;  %1329 = vmatprep.mubr.msk.f32.mxu1 %vm1427_vm0, %v1426_v0 }
 0x438   :  { %1299 = vmatprep.subr.mxu1 %v1426_v0 }
 0x439   :  { %1300 = vmatpush3.msra.mxu1 %v1472_v2 }
 0x43a   :  { %1301 = vmatprep.subr.mxu1 %v1426_v0 }
 0x43b   :  { %1302 = vmatpush3.msra.mxu1 %v1482_v3 }
 0x43c   :  { %1303 = vmatprep.subr.mxu1 %v1426_v0 }
 0x43d   :  { %1304 = vmatpush3.msra.mxu1 %v1491_v4 }
 0x43e   :  { %1305 = vmatprep.subr.mxu1 %v1426_v0 }
 0x43f   :  { %1306 = vmatpush3.msra.mxu1 %v1500_v5  ;;  %v891_v5 = vld [vmem:[%s1968_s4] ss:$0 sm:$0xff] }
 0x440   :  { %1307 = vmatprep.subr.mxu1 %v1426_v0 }
 0x441   :  { %1308 = vmatpush3.msra.mxu1 %v1509_v6 }
 0x442   :  { %1309 = vmatprep.subr.mxu1 %v1426_v0 }
 0x443   :  { %1310 = vmatpush3.msra.mxu1 %v1518_v7 }
 0x444   :  { %1311 = vmatprep.subr.mxu1 %v1426_v0 }
 0x445   :  { %1312 = vmatpush3.msra.mxu1 %v1527_v8 }
 0x446   :  { %1313 = vmatprep.subr.mxu1 %v1426_v0 }
 0x447   :  { %1314 = vmatpush3.msra.mxu1 %v1536_v9 }
 0x448   :  { %1315 = vmatprep.subr.mxu1 %v1426_v0 }
 0x449   :  { %1316 = vmatpush3.msra.mxu1 %v1545_v10 }
 0x44a   :  { %1317 = vmatprep.subr.mxu1 %v1426_v0 }
 0x44b   :  { %1318 = vmatpush3.msra.mxu1 %v1554_v11 }
 0x44c   :  { %1319 = vmatprep.subr.mxu1 %v1426_v0 }
 0x44d   :  { %1320 = vmatpush3.msra.mxu1 %v1563_v12 }
 0x44e   :  { %1321 = vmatprep.subr.mxu1 %v1426_v0 }
 0x44f   :  { %1322 = vmatpush3.msra.mxu1 %v1572_v13 }
 0x450   :  { %1323 = vmatprep.subr.mxu1 %v1426_v0 }
 0x451   :  { %1324 = vmatpush3.msra.mxu1 %v1581_v14 }
 0x452   :  { %1325 = vmatprep.subr.mxu1 %v1426_v0 }
 0x453   :  { %1326 = vmatpush3.msra.mxu1 %v1590_v15 }
 0x454   :  { %1327 = vmatprep.subr.mxu1 %v1426_v0  ;;  %v889_v0 = vld [vmem:[%s1966_s0 + $0x30] sm:$0xff] }
 0x455   :  { %1328 = vmatpush3.msra.mxu1 %v1599_v16 }
 0x4f6   :  { %v491_v45 = vpop.f32.mrf.mxu1 }
 0x4f7   :  { %v495_v46 = vadd.f32 %v888_v44, %v491_v45 }
 0x4f8   :  { %v1261_v47 = vpop.f32.mrf.mxu1 }
 0x4f9   :  { %1388 = vtanh.f32 %v495_v46 }
 0x506   :  { %v1389_v48 = vpop.eup %1388 }
 0x507   :  { %1295 = vmatmul.mubr.f32.vlgmr.msra.gmra.mxu0 %v1389_v48 }
 0x508   :  { %1333 = vmatpush3.msra.mxu0 %v675_v43  ;;  %1364 = vmatprep.mubr.f32.mxu0 %v1653_v22 }
 0x509   :  { %1334 = vmatprep.subr.mxu0 %v674_v49 }
 0x50a   :  { %1335 = vmatpush3.msra.mxu0 %v674_v49 }
 0x50b   :  { %1336 = vmatprep.subr.mxu0 %v673_v50 }
 0x50c   :  { %1337 = vmatpush3.msra.mxu0 %v673_v50 }
 0x50d   :  { %1338 = vmatprep.subr.mxu0 %v672_v51 }
 0x50e   :  { %1339 = vmatpush3.msra.mxu0 %v672_v51 }
 0x50f   :  { %1340 = vmatprep.subr.mxu0 %v671_v52 }
 0x510   :  { %1341 = vmatpush3.msra.mxu0 %v671_v52 }
 0x511   :  { %1342 = vmatprep.subr.mxu0 %v670_v53 }
 0x512   :  { %1343 = vmatpush3.msra.mxu0 %v670_v53 }
 0x513   :  { %1344 = vmatprep.subr.mxu0 %v669_v54 }
 0x514   :  { %1345 = vmatpush3.msra.mxu0 %v669_v54 }
 0x515   :  { %1346 = vmatprep.subr.mxu0 %v668_v55 }
 0x516   :  { %1347 = vmatpush3.msra.mxu0 %v668_v55 }
 0x517   :  { %1348 = vmatprep.subr.mxu0 %v667_v56 }
 0x518   :  { %1349 = vmatpush3.msra.mxu0 %v667_v56 }
 0x519   :  { %1350 = vmatprep.subr.mxu0 %v666_v57 }
 0x51a   :  { %1351 = vmatpush3.msra.mxu0 %v666_v57 }
 0x51b   :  { %1352 = vmatprep.subr.mxu0 %v665_v58 }
 0x51c   :  { %1353 = vmatpush3.msra.mxu0 %v665_v58 }
 0x51d   :  { %1354 = vmatprep.subr.mxu0 %v664_v59 }
 0x51e   :  { %1355 = vmatpush3.msra.mxu0 %v664_v59 }
 0x51f   :  { %1356 = vmatprep.subr.mxu0 %v663_v60 }
 0x520   :  { %1357 = vmatpush3.msra.mxu0 %v663_v60 }
 0x521   :  { %1358 = vmatprep.subr.mxu0 %v662_v61 }
 0x522   :  { %1359 = vmatpush3.msra.mxu0 %v662_v61 }
 0x523   :  { %1360 = vmatprep.subr.mxu0 %v661_v62 }
 0x524   :  { %1361 = vmatpush3.msra.mxu0 %v661_v62 }
 0x525   :  { %1362 = vmatprep.subr.mxu0 %v660_v63 }
 0x526   :  { %1363 = vmatpush3.msra.mxu0 %v660_v63 }
 0x527   :  { %1365 = vmatmul.mubr.f32.vlgmr.msra.gmra.mxu0 %v1693_v27 }
 0x528   :  { %1367 = vmatprep.mubr.f32.mxu0 %v1733_v32 }
 0x52b   :  { %1368 = vmatmul.mubr.f32.gmra.mxu0 %v1773_v37 }
 0x52c   :  { %1370 = vmatprep.mubr.f32.mxu0 %v1812_v42 }
 0x52f   :  { %1371 = vmatmul.mubr.f32.gmra.mxu0 %v1389_v48 }
 0x5c7   :  { %v567_v1 = vpop.f32.mrf.mxu0 }
 0x5c8   :  { %v571_v2 = vadd.f32 %v889_v0, %v567_v1 }
 0x5c9   :  { %v1296_v3 = vpop.f32.mrf.mxu0 }
 0x5ca   :  { %1390 = vtanh.f32 %v571_v2 }
 0x5d7   :  { %v1391_v4 = vpop.eup %1390 }
 0x5d8   :  { %1330 = vmatmul.mubr.f32.vlgmr.msra.gmra.mxu1 %v1391_v4  ;;  %1373 = vmatprep.mubr.f32.mxu0 %v1391_v4 }
 0x5e7   :  { %v1366_v6 = vpop.f32.mrf.mxu0 }
 0x5e8   :  { %v755_v7 = vadd.f32 %v1366_v6, %v891_v5 }
 0x5e9   :  { %v749_v8 = vpop.f32.mrf.mxu0 }
 0x5ea   :  { %790 = vmax.xlane.f32.xlu0 %v755_v7  ;;  %v750_v10 = vadd.f32 %v891_v5, %v749_v8 }
 0x5eb   :  { %v1369_v9 = vpop.f32.mrf.mxu0 }
 0x5ec   :  { %v765_v11 = vadd.f32 %v1369_v9, %v891_v5 }
 0x5ed   :  { %v759_v12 = vpop.f32.mrf.mxu0 }
 0x5ee   :  { %794 = vmax.xlane.f32.xlu1 %v765_v11  ;;  %788 = vmax.xlane.f32.xlu0 %v750_v10  ;;  %v760_v14 = vadd.f32 %v891_v5, %v759_v12 }
 0x5ef   :  { %v1372_v13 = vpop.f32.mrf.mxu0 }
 0x5f0   :  { %v775_v17 = vadd.f32 %v1372_v13, %v891_v5 }
 0x5f1   :  { %v769_v15 = vpop.f32.mrf.mxu0 }
 0x5f2   :  { %v770_v16 = vadd.f32 %v891_v5, %v769_v15  ;;  %792 = vmax.xlane.f32.xlu1 %v760_v14 }
 0x5f4   :  { %796 = vmax.xlane.f32.xlu0 %v770_v16 }
 0x5f6   :  { %798 = vmax.xlane.f32.xlu1 %v775_v17 }
 0x673   :  { %v791_v23 = vpop.xlane.xlu0 %790 }
 0x674   :  { %v1916_v27 = vsub.f32 %v755_v7, %v791_v23 }
 0x676   :  { %v814_v29 = vmul.f32 1.442695, %v1916_v27 }
 0x677   :  { %v795_v24 = vpop.xlane.xlu1 %794  ;;  %v789_v25 = vpop.xlane.xlu0 %788 }
 0x678   :  { %v1918_v28 = vsub.f32 %v750_v10, %v789_v25  ;;  %v1921_v30 = vsub.f32 %v765_v11, %v795_v24 }
 0x67a   :  { %v812_v32 = vmul.f32 1.442695, %v1918_v28  ;;  %v818_v35 = vmul.f32 1.442695, %v1921_v30 }
 0x67b   :  { %v793_v26 = vpop.xlane.xlu1 %792 }
 0x67c   :  { %v1924_v33 = vsub.f32 %v760_v14, %v793_v26 }
 0x67d   :  { %v797_v34 = vpop.xlane.xlu0 %796 }
 0x67e   :  { %v816_v37 = vmul.f32 1.442695, %v1924_v33  ;;  %v1930_v38 = vsub.f32 %v770_v16, %v797_v34 }
 0x67f   :  { %v799_v31 = vpop.xlane.xlu1 %798 }
 0x680   :  { %v1927_v36 = vsub.f32 %v775_v17, %v799_v31  ;;  %v820_v40 = vmul.f32 1.442695, %v1930_v38 }
 0x682   :  { %v822_v39 = vmul.f32 1.442695, %v1927_v36 }
 0x698   :  { %v643_v19 = vpop.f32.mrf.mxu1 }
 0x699   :  { %v647_v20 = vadd.f32 %v890_v18, %v643_v19 }
 0x69a   :  { %v1331_v21 = vpop.f32.mrf.mxu1 }
 0x69b   :  { %1392 = vtanh.f32 %v647_v20 }
 0x69c   :  { %1394 = vpow2.f32 %v814_v29 }
 0x69d   :  { %1396 = vpow2.f32 %v812_v32 }
 0x69e   :  { %1398 = vpow2.f32 %v818_v35 }
 0x69f   :  { %1400 = vpow2.f32 %v816_v37 }
 0x6a0   :  { %1402 = vpow2.f32 %v822_v39 }
 0x6a1   :  { %1404 = vpow2.f32 %v820_v40 }
 0x6a8   :  { %v1393_v22 = vpop.eup %1392 }
 0x6a9   :  { %651 = vst [vmem:[%s1969_s6] sm:$0xff] %v1393_v22  ;;  %1374 = vmatmul.mubr.f32.gmra.mxu0 %v1393_v22  ;;  %v1395_v45 = vpop.eup %1394 }
 0x6aa   :  { %v1397_v46 = vpop.eup %1396 }
 0x6ab   :  { %v1399_v47 = vpop.eup %1398 }
 0x6ac   :  { %v1401_v48 = vpop.eup %1400 }
 0x6ad   :  { %v1403_v49 = vpop.eup %1402 }
 0x6ae   :  { %v1405_v50 = vpop.eup %1404 }
 0x769   :  { %v1375_v41 = vpop.f32.mrf.mxu0 }
 0x76a   :  { %v785_v42 = vadd.f32 %v1375_v41, %v891_v5 }
 0x76b   :  { %v779_v43 = vpop.f32.mrf.mxu0 }
 0x76c   :  { %v780_v44 = vadd.f32 %v891_v5, %v779_v43  ;;  %802 = vmax.xlane.f32.xlu1 %v785_v42 }
 0x76e   :  { %800 = vmax.xlane.f32.xlu0 %v780_v44 }
 0x770   :  { %830 = vadd.xlane.f32.xlu1 %v1395_v45 }
 0x772   :  { %828 = vadd.xlane.f32.xlu0 %v1397_v46 }
 0x774   :  { %834 = vadd.xlane.f32.xlu1 %v1399_v47 }
 0x776   :  { %832 = vadd.xlane.f32.xlu0 %v1401_v48 }
 0x778   :  { %838 = vadd.xlane.f32.xlu1 %v1403_v49 }
 0x77a   :  { %836 = vadd.xlane.f32.xlu0 %v1405_v50 }
 0x7f5   :  { %v803_v51 = vpop.xlane.xlu1 %802 }
 0x7f6   :  { %v811_v52 = vsub.f32 %v785_v42, %v803_v51 }
 0x7f7   :  { %v801_v53 = vpop.xlane.xlu0 %800 }
 0x7f8   :  { %v826_v54 = vmul.f32 1.442695, %v811_v52  ;;  %v810_v55 = vsub.f32 %v780_v44, %v801_v53 }
 0x7f9   :  { %v831_v56 = vpop.xlane.xlu1 %830 }
 0x7fa   :  { %1406 = vpow2.f32 %v826_v54  ;;  %v824_v57 = vmul.f32 1.442695, %v810_v55 }
 0x7fb   :  { %1408 = vlog2.f32 %v831_v56  ;;  %v829_v58 = vpop.xlane.xlu0 %828 }
 0x7fc   :  { %1410 = vpow2.f32 %v824_v57 }
 0x7fd   :  { %1412 = vlog2.f32 %v829_v58  ;;  %v835_v59 = vpop.xlane.xlu1 %834 }
 0x7fe   :  { %1414 = vlog2.f32 %v835_v59 }
 0x7ff   :  { %v833_v60 = vpop.xlane.xlu0 %832 }
 0x800   :  { %1416 = vlog2.f32 %v833_v60 }
 0x801   :  { %v839_v61 = vpop.xlane.xlu1 %838 }
 0x802   :  { %1418 = vlog2.f32 %v839_v61 }
 0x803   :  { %v837_v62 = vpop.xlane.xlu0 %836 }
 0x804   :  { %1420 = vlog2.f32 %v837_v62 }
 0x807   :  { %v1407_v63 = vpop.eup %1406 }
 0x808   :  { %v1409_v0 = vpop.eup %1408  ;;  %842 = vadd.xlane.f32.xlu1 %v1407_v63 }
 0x809   :  { %v1411_v1 = vpop.eup %1410  ;;  %v847_v2 = vmul.f32 0.6931472, %v1409_v0 }
 0x80a   :  { %v1413_v3 = vpop.eup %1412  ;;  %840 = vadd.xlane.f32.xlu0 %v1411_v1 }
 0x80b   :  { %v1415_v4 = vpop.eup %1414  ;;  %v861_v5 = vsub.f32 %v1916_v27, %v847_v2  ;;  %v845_v6 = vmul.f32 0.6931472, %v1413_v3 }
 0x80c   :  { %v851_v7 = vmul.f32 0.6931472, %v1415_v4 }
 0x80d   :  { %v1417_v8 = vpop.eup %1416  ;;  %869 = vst [vmem:[%s1970_s5 + $0x8] sm:$0xff] %v861_v5  ;;  %v860_v9 = vsub.f32 %v1918_v28, %v845_v6 }
 0x80e   :  { %v863_v10 = vsub.f32 %v1921_v30, %v851_v7  ;;  %v849_v11 = vmul.f32 0.6931472, %v1417_v8 }
 0x80f   :  { %v1419_v12 = vpop.eup %1418  ;;  %868 = vst [vmem:[%s1970_s5] sm:$0xff] %v860_v9 }
 0x810   :  { %871 = vst [vmem:[%s1970_s5 + $0x18] sm:$0xff] %v863_v10  ;;  %v862_v13 = vsub.f32 %v1924_v33, %v849_v11  ;;  %v855_v14 = vmul.f32 0.6931472, %v1419_v12 }
 0x811   :  { %v1421_v15 = vpop.eup %1420 }
 0x812   :  { %870 = vst [vmem:[%s1970_s5 + $0x10] sm:$0xff] %v862_v13  ;;  %v865_v16 = vsub.f32 %v1927_v36, %v855_v14  ;;  %v853_v17 = vmul.f32 0.6931472, %v1421_v15 }
 0x814   :  { %873 = vst [vmem:[%s1970_s5 + $0x28] sm:$0xff] %v865_v16  ;;  %v864_v18 = vsub.f32 %v1930_v38, %v853_v17 }
 0x816   :  { %872 = vst [vmem:[%s1970_s5 + $0x20] sm:$0xff] %v864_v18 }
 0x891   :  { %v843_v19 = vpop.xlane.xlu1 %842 }
 0x892   :  { %1422 = vlog2.f32 %v843_v19 }
 0x893   :  { %v841_v20 = vpop.xlane.xlu0 %840 }
 0x894   :  { %1424 = vlog2.f32 %v841_v20 }
 0x89f   :  { %v1423_v21 = vpop.eup %1422 }
 0x8a0   :  { %v859_v22 = vmul.f32 0.6931472, %v1423_v21 }
 0x8a1   :  { %v1425_v23 = vpop.eup %1424 }
 0x8a2   :  { %v867_v24 = vsub.f32 %v811_v52, %v859_v22  ;;  %v857_v25 = vmul.f32 0.6931472, %v1425_v23 }
 0x8a4   :  { %875 = vst [vmem:[%s1970_s5 + $0x38] sm:$0xff] %v867_v24  ;;  %v866_v26 = vsub.f32 %v810_v55, %v857_v25 }
 0x8a6   :  { %874 = vst [vmem:[%s1970_s5 + $0x30] sm:$0xff] %v866_v26 }

</bundles_post_ra>
